<compile_context>
chip_gen: v7x
topology: tpu7x:2x2x1
jax: 0.10.0
libtpu: 0.0.40
codegen_flags: <defaults>
</compile_context>

<pallas_src>
import functools

import jax
import jax.numpy as jnp
from jax.experimental import pallas as pl
from jax.experimental.pallas import tpu as pltpu

HIDDEN = 128


def _round_up(n, m):
    return ((n + m - 1) // m) * m


def _cdiv(a, b):
    return (a + b - 1) // b


def dqn_kernel(x_ref, w1_ref, b1_ref, w2_ref, b2_ref, w3_ref, b3_ref, o_ref):
    bf16 = jnp.bfloat16
    A = o_ref.shape[-1]                                  # static (e.g. 2)

    # ---- layer 1 on the VPU: K=4 contraction as broadcast FMAs (f32) ----
    x = x_ref[...]                                       # (TB, F) f32
    w1 = w1_ref[...]                                     # (F, H)  f32
    F = w1.shape[0]
    h1 = x[:, 0:1] * w1[0:1, :]
    for f in range(1, F):
        h1 = h1 + x[:, f:f + 1] * w1[f:f + 1, :]
    h1 = jnp.maximum(h1 + b1_ref[...], 0.0)              # (TB, H) f32

    # ---- layer 2 on the MXU: bf16 operands, f32 accumulate ----
    h2 = jnp.dot(h1.astype(bf16), w2_ref[...],
                 preferred_element_type=jnp.float32)
    h2 = jnp.maximum(h2 + b2_ref[...], 0.0)              # (TB, H) f32

    # ---- layer 3 on the MXU (128-lane padded weights), narrow store ----
    out = jnp.dot(h2.astype(bf16), w3_ref[...],
                  preferred_element_type=jnp.float32)    # (TB, H) f32
    o_ref[...] = (out[:, :A] + b3_ref[...]).astype(o_ref.dtype)


def pack_dqn_params(params):
    """One-time prep: cast MXU weights to bf16, pad layer-3 weights to 128
    output lanes (bias stays narrow so num_actions is recoverable from its
    shape), reshape biases to (1, N) rows."""
    w1 = params["w1"].astype(jnp.float32)                # (F, H) f32, used on VPU
    w2 = params["w2"].astype(jnp.bfloat16)               # (H, H) bf16
    w3 = params["w3"]                                    # (H, A) f32
    H = w1.shape[1]
    A = w3.shape[1]
    w3p = jnp.zeros((H, H), jnp.float32).at[:, :A].set(w3).astype(jnp.bfloat16)

    return {
        "w1": w1,
        "b1": params["b1"].reshape(1, H).astype(jnp.float32),
        "w2": w2,
        "b2": params["b2"].reshape(1, H).astype(jnp.float32),
        "w3": w3p,                                       # (H, H) bf16, padded
        "b3": params["b3"].reshape(1, A).astype(jnp.float32),
    }


@functools.partial(jax.jit, static_argnames=("block_b",))
def dqn_forward(x, packed, *, block_b=2048):
    """x: (B, num_observations) f32. Returns (B, num_actions) f32 Q-values."""
    w1, b1 = packed["w1"], packed["b1"]
    w2, b2 = packed["w2"], packed["b2"]
    w3, b3 = packed["w3"], packed["b3"]
    F, H = w1.shape
    A = b3.shape[1]                                      # static inside jit
    B = x.shape[0]

    # Tile the batch: TB % 8 == 0 always; aim for >=2 (even) grid steps so
    # v7x's two TensorCores both get work; pad B only up to a multiple of TB.
    n_tiles = max(1, _cdiv(B, block_b))
    if n_tiles == 1 and B > 8:
        n_tiles = 2
    if n_tiles > 1 and n_tiles % 2:
        n_tiles += 1
    TB = max(8, _round_up(_cdiv(B, n_tiles), 8))
    Bp = _round_up(B, TB)
    xp = x if Bp == B else jnp.zeros((Bp, F), x.dtype).at[:B].set(x)

    out = pl.pallas_call(
        dqn_kernel,
        out_shape=jax.ShapeDtypeStruct((Bp, A), jnp.float32),
        grid=(Bp // TB,),
        in_specs=[
            pl.BlockSpec((TB, F), lambda i: (i, 0)),     # activations: tiled over batch
            pl.BlockSpec((F, H), lambda i: (0, 0)),      # params: VMEM-resident
            pl.BlockSpec((1, H), lambda i: (0, 0)),
            pl.BlockSpec((H, H), lambda i: (0, 0)),
            pl.BlockSpec((1, H), lambda i: (0, 0)),
            pl.BlockSpec((H, H), lambda i: (0, 0)),
            pl.BlockSpec((1, A), lambda i: (0, 0)),
        ],
        out_specs=pl.BlockSpec((TB, A), lambda i: (i, 0)),   # narrow (TB, A) writeback
        compiler_params=pltpu.CompilerParams(
            dimension_semantics=("parallel",)),              # megacore on v7x
    )(xp, w1, b1, w2, b2, w3, b3)

    return out[:B]


def init_dqn_params(key, num_observations, num_actions, hidden=HIDDEN):
    """PyTorch nn.Linear default init: U[-1/sqrt(fan_in), 1/sqrt(fan_in)]."""
    def linear(key, fan_in, fan_out):
        kw, kb = jax.random.split(key)
        bound = 1.0 / jnp.sqrt(jnp.float32(fan_in))
        w = jax.random.uniform(kw, (fan_in, fan_out), jnp.float32, -bound, bound)
        b = jax.random.uniform(kb, (fan_out,), jnp.float32, -bound, bound)
        return w, b

    k1, k2, k3 = jax.random.split(key, 3)
    w1, b1 = linear(k1, num_observations, hidden)
    w2, b2 = linear(k2, hidden, hidden)
    w3, b3 = linear(k3, hidden, num_actions)
    return {"w1": w1, "b1": b1, "w2": w2, "b2": b2, "w3": w3, "b3": b3}


def dqn_reference(x, p):
    """Same math as the kernel: f32 layer-1, bf16 MXU operands for layers 2-3
    with f32 accumulation and f32 bias/ReLU epilogues."""
    bf16 = jnp.bfloat16
    h1 = jnp.maximum(
        jnp.dot(x, p["w1"], precision=jax.lax.Precision.HIGHEST) + p["b1"], 0.0)
    h2 = jnp.maximum(
        jnp.dot(h1.astype(bf16), p["w2"].astype(bf16),
                preferred_element_type=jnp.float32) + p["b2"], 0.0)
    return jnp.dot(h2.astype(bf16), p["w3"].astype(bf16),
                   preferred_element_type=jnp.float32) + p["b3"]


if __name__ == "__main__":
    # CartPole-v1: 4 observations, 2 actions
    num_observations, num_actions = 4, 2

    key = jax.random.PRNGKey(0)
    k_params, k_x1, k_x2 = jax.random.split(key, 3)
    params = init_dqn_params(k_params, num_observations, num_actions)
    packed = pack_dqn_params(params)

    # small single-tile batch (policy-style call)
    x_small = jax.random.normal(k_x1, (8, num_observations), jnp.float32)
    out_small = jax.block_until_ready(dqn_forward(x_small, packed))
    ref_small = dqn_reference(x_small, params)
    assert out_small.shape == (8, num_actions)
    assert jnp.allclose(out_small, ref_small, atol=2e-2, rtol=2e-2), "small-batch mismatch"

    # larger batch exercising a multi-step ("parallel") batch grid with resident weights
    x_big = jax.random.normal(k_x2, (256, num_observations), jnp.float32)
    out_big = jax.block_until_ready(dqn_forward(x_big, packed, block_b=128))
    ref_big = dqn_reference(x_big, params)
    assert out_big.shape == (256, num_actions)
    assert jnp.allclose(out_big, ref_big, atol=2e-2, rtol=2e-2), "big-batch mismatch"

    print("KERNEL_OK")
</pallas_src>

<mosaic_0001>
module attributes {stable_mosaic.version = 11 : i64} {
  func.func @dqn_kernel(%arg0: i32, %arg1: memref<8x4xf32, #tpu.memory_space<vmem>>, %arg2: memref<4x128xf32, #tpu.memory_space<vmem>>, %arg3: memref<1x128xf32, #tpu.memory_space<vmem>>, %arg4: memref<128x128xbf16, #tpu.memory_space<vmem>>, %arg5: memref<1x128xf32, #tpu.memory_space<vmem>>, %arg6: memref<128x128xbf16, #tpu.memory_space<vmem>>, %arg7: memref<1x2xf32, #tpu.memory_space<vmem>>, %arg8: memref<8x2xf32, #tpu.memory_space<vmem>>) attributes {dimension_semantics = [#tpu.dimension_semantics<parallel>], iteration_bounds = array<i64: 1>, scalar_prefetch = 0 : i64, scratch_operands = 0 : i64, tpu.core_type = #tpu.core_type<tc>, window_params = [{transform_indices = @transform_0, window_bounds = array<i64: 8, 4>}, {pipeline_mode = #tpu.pipeline_mode<synchronous>, transform_indices = @transform_1, window_bounds = array<i64: 4, 128>}, {pipeline_mode = #tpu.pipeline_mode<synchronous>, transform_indices = @transform_2, window_bounds = array<i64: 1, 128>}, {pipeline_mode = #tpu.pipeline_mode<synchronous>, transform_indices = @transform_3, window_bounds = array<i64: 128, 128>}, {pipeline_mode = #tpu.pipeline_mode<synchronous>, transform_indices = @transform_4, window_bounds = array<i64: 1, 128>}, {pipeline_mode = #tpu.pipeline_mode<synchronous>, transform_indices = @transform_5, window_bounds = array<i64: 128, 128>}, {pipeline_mode = #tpu.pipeline_mode<synchronous>, transform_indices = @transform_6, window_bounds = array<i64: 1, 2>}, {transform_indices = @transform_7, window_bounds = array<i64: 8, 2>}]} {
    %c0 = arith.constant 0 : index
    %c0_0 = arith.constant 0 : index
    %0 = vector.load %arg1[%c0, %c0_0] : memref<8x4xf32, #tpu.memory_space<vmem>>, vector<8x4xf32>
    %c0_1 = arith.constant 0 : index
    %c0_2 = arith.constant 0 : index
    %1 = vector.load %arg2[%c0_1, %c0_2] : memref<4x128xf32, #tpu.memory_space<vmem>>, vector<4x128xf32>
    %2 = vector.extract_strided_slice %0 {offsets = [0, 0], sizes = [8, 1], strides = [1, 1]} : vector<8x4xf32> to vector<8x1xf32>
    %3 = vector.extract_strided_slice %1 {offsets = [0, 0], sizes = [1, 128], strides = [1, 1]} : vector<4x128xf32> to vector<1x128xf32>
    %4 = vector.broadcast %2 : vector<8x1xf32> to vector<8x128xf32>
    %5 = vector.broadcast %3 : vector<1x128xf32> to vector<8x128xf32>
    %6 = arith.mulf %4, %5 : vector<8x128xf32>
    %7 = vector.extract_strided_slice %0 {offsets = [0, 1], sizes = [8, 1], strides = [1, 1]} : vector<8x4xf32> to vector<8x1xf32>
    %8 = vector.extract_strided_slice %1 {offsets = [1, 0], sizes = [1, 128], strides = [1, 1]} : vector<4x128xf32> to vector<1x128xf32>
    %9 = vector.broadcast %7 : vector<8x1xf32> to vector<8x128xf32>
    %10 = vector.broadcast %8 : vector<1x128xf32> to vector<8x128xf32>
    %11 = arith.mulf %9, %10 : vector<8x128xf32>
    %12 = arith.addf %6, %11 : vector<8x128xf32>
    %13 = vector.extract_strided_slice %0 {offsets = [0, 2], sizes = [8, 1], strides = [1, 1]} : vector<8x4xf32> to vector<8x1xf32>
    %14 = vector.extract_strided_slice %1 {offsets = [2, 0], sizes = [1, 128], strides = [1, 1]} : vector<4x128xf32> to vector<1x128xf32>
    %15 = vector.broadcast %13 : vector<8x1xf32> to vector<8x128xf32>
    %16 = vector.broadcast %14 : vector<1x128xf32> to vector<8x128xf32>
    %17 = arith.mulf %15, %16 : vector<8x128xf32>
    %18 = arith.addf %12, %17 : vector<8x128xf32>
    %19 = vector.extract_strided_slice %0 {offsets = [0, 3], sizes = [8, 1], strides = [1, 1]} : vector<8x4xf32> to vector<8x1xf32>
    %20 = vector.extract_strided_slice %1 {offsets = [3, 0], sizes = [1, 128], strides = [1, 1]} : vector<4x128xf32> to vector<1x128xf32>
    %21 = vector.broadcast %19 : vector<8x1xf32> to vector<8x128xf32>
    %22 = vector.broadcast %20 : vector<1x128xf32> to vector<8x128xf32>
    %23 = arith.mulf %21, %22 : vector<8x128xf32>
    %24 = arith.addf %18, %23 : vector<8x128xf32>
    %c0_3 = arith.constant 0 : index
    %c0_4 = arith.constant 0 : index
    %25 = vector.load %arg3[%c0_3, %c0_4] : memref<1x128xf32, #tpu.memory_space<vmem>>, vector<1x128xf32>
    %26 = vector.broadcast %25 : vector<1x128xf32> to vector<8x128xf32>
    %27 = arith.addf %24, %26 : vector<8x128xf32>
    %cst = arith.constant 0.000000e+00 : f32
    %28 = vector.broadcast %cst : f32 to vector<8x128xf32>
    %29 = arith.maximumf %27, %28 : vector<8x128xf32>
    %30 = arith.truncf %29 : vector<8x128xf32> to vector<8x128xbf16>
    %c0_5 = arith.constant 0 : index
    %c0_6 = arith.constant 0 : index
    %31 = vector.load %arg4[%c0_5, %c0_6] : memref<128x128xbf16, #tpu.memory_space<vmem>>, vector<128x128xbf16>
    %cst_7 = arith.constant dense<0.000000e+00> : vector<8x128xf32>
    %32 = tpu.matmul %30, %31, %cst_7 {dimension_numbers = #tpu.dot_dimension_numbers<[1], [0], [0], [1], [0, 0, 1, 1], [], []>} : vector<8x128xbf16>, vector<128x128xbf16>, vector<8x128xf32> -> vector<8x128xf32>
    %c0_8 = arith.constant 0 : index
    %c0_9 = arith.constant 0 : index
    %33 = vector.load %arg5[%c0_8, %c0_9] : memref<1x128xf32, #tpu.memory_space<vmem>>, vector<1x128xf32>
    %34 = vector.broadcast %33 : vector<1x128xf32> to vector<8x128xf32>
    %35 = arith.addf %32, %34 : vector<8x128xf32>
    %cst_10 = arith.constant 0.000000e+00 : f32
    %36 = vector.broadcast %cst_10 : f32 to vector<8x128xf32>
    %37 = arith.maximumf %35, %36 : vector<8x128xf32>
    %38 = arith.truncf %37 : vector<8x128xf32> to vector<8x128xbf16>
    %c0_11 = arith.constant 0 : index
    %c0_12 = arith.constant 0 : index
    %39 = vector.load %arg6[%c0_11, %c0_12] : memref<128x128xbf16, #tpu.memory_space<vmem>>, vector<128x128xbf16>
    %cst_13 = arith.constant dense<0.000000e+00> : vector<8x128xf32>
    %40 = tpu.matmul %38, %39, %cst_13 {dimension_numbers = #tpu.dot_dimension_numbers<[1], [0], [0], [1], [0, 0, 1, 1], [], []>} : vector<8x128xbf16>, vector<128x128xbf16>, vector<8x128xf32> -> vector<8x128xf32>
    %41 = vector.extract_strided_slice %40 {offsets = [0, 0], sizes = [8, 2], strides = [1, 1]} : vector<8x128xf32> to vector<8x2xf32>
    %c0_14 = arith.constant 0 : index
    %c0_15 = arith.constant 0 : index
    %42 = vector.load %arg7[%c0_14, %c0_15] : memref<1x2xf32, #tpu.memory_space<vmem>>, vector<1x2xf32>
    %43 = vector.broadcast %42 : vector<1x2xf32> to vector<8x2xf32>
    %44 = arith.addf %41, %43 : vector<8x2xf32>
    %c0_16 = arith.constant 0 : index
    %c0_17 = arith.constant 0 : index
    %45 = vector.load %arg8[%c0_16, %c0_17] : memref<8x2xf32, #tpu.memory_space<vmem>>, vector<8x2xf32>
    tpu.vector_store %arg8[%c0_16, %c0_17], %44 {strides = array<i32>} : memref<8x2xf32, #tpu.memory_space<vmem>>, vector<8x2xf32>,
    return
  }
  func.func @transform_0(%arg0: i32) -> (i32, i32) {
    %c0_i32 = arith.constant 0 : i32
    %c0_i32_0 = arith.constant 0 : i32
    return %arg0, %c0_i32 : i32, i32
  }
  func.func @transform_1(%arg0: i32) -> (i32, i32) {
    %c0_i32 = arith.constant 0 : i32
    %c0_i32_0 = arith.constant 0 : i32
    %c0_i32_1 = arith.constant 0 : i32
    return %c0_i32, %c0_i32_0 : i32, i32
  }
  func.func @transform_2(%arg0: i32) -> (i32, i32) {
    %c0_i32 = arith.constant 0 : i32
    %c0_i32_0 = arith.constant 0 : i32
    %c0_i32_1 = arith.constant 0 : i32
    return %c0_i32, %c0_i32_0 : i32, i32
  }
  func.func @transform_3(%arg0: i32) -> (i32, i32) {
    %c0_i32 = arith.constant 0 : i32
    %c0_i32_0 = arith.constant 0 : i32
    %c0_i32_1 = arith.constant 0 : i32
    return %c0_i32, %c0_i32_0 : i32, i32
  }
  func.func @transform_4(%arg0: i32) -> (i32, i32) {
    %c0_i32 = arith.constant 0 : i32
    %c0_i32_0 = arith.constant 0 : i32
    %c0_i32_1 = arith.constant 0 : i32
    return %c0_i32, %c0_i32_0 : i32, i32
  }
  func.func @transform_5(%arg0: i32) -> (i32, i32) {
    %c0_i32 = arith.constant 0 : i32
    %c0_i32_0 = arith.constant 0 : i32
    %c0_i32_1 = arith.constant 0 : i32
    return %c0_i32, %c0_i32_0 : i32, i32
  }
  func.func @transform_6(%arg0: i32) -> (i32, i32) {
    %c0_i32 = arith.constant 0 : i32
    %c0_i32_0 = arith.constant 0 : i32
    %c0_i32_1 = arith.constant 0 : i32
    return %c0_i32, %c0_i32_0 : i32, i32
  }
  func.func @transform_7(%arg0: i32) -> (i32, i32) {
    %c0_i32 = arith.constant 0 : i32
    %c0_i32_0 = arith.constant 0 : i32
    return %arg0, %c0_i32 : i32, i32
  }
}

</mosaic_0001>

<bundles_post_ra>
// kernel: dqn_forward.1
= control target key start
LH: loop header
LB: loop body
LE: loop exit
PB: predicated region body
PF: predicated region fallthrough
CT: control target
= control target key end

     0   :  { %12 = vsyncpa [#allocation3], 0  ;;  %s606_s0 = inlined_call_operand.vmem [shape: f32[8,4], index: 0, kind: input, shape index: {}]   ;;  %s607_s1 = inlined_call_operand.vmem [shape: f32[4,128], index: 1, kind: input, shape index: {}]   ;;  %s608_s2 = inlined_call_operand.vmem [shape: f32[1,128], index: 2, kind: input, shape index: {}]   ;;  %s609_s3 = inlined_call_operand.hbm [shape: bf16[128,128], index: 3, kind: input, shape index: {}]   ;;  %s610_s4 = inlined_call_operand.vmem [shape: f32[1,128], index: 4, kind: input, shape index: {}]   ;;  %s611_s5 = inlined_call_operand.hbm [shape: bf16[128,128], index: 5, kind: input, shape index: {}]   ;;  %s612_s6 = inlined_call_operand.vmem [shape: f32[1,2], index: 6, kind: input, shape index: {}]   ;;  %s613_s7 = inlined_call_operand.vmem [shape: f32[8,2], index: 7, kind: output, shape index: {}]  }
   0x1   :  { %13 = vsyncpa [#allocation5], 0  ;;  %s496_s24 = smov [#allocation2]   ;;  %s448_s28 = scalar_lea.hbm %s609_s3, 1024 }
   0x2   :  { %s25_s25 = sshll.u32 %s496_s24, 4  ;;  %p449_p0 = scmp.ne.s32.totalorder %s609_s3, %s448_s28  ;;  %s26_s25 = int_to_ptr.vmem [resolvable:$true] %s25_s25 }
   0x3   :  { %p452_p1 = scmp.lt.u32.totalorder %s448_s28, %s609_s3 }
   0x5   :  { %p454_p2 = pnand %p452_p1, %p449_p0 }
   0x7   :  { %457 = shalt.err (!%p454_p2)
}
   0x8   :  { %s458_s10 = scalar_lea.vmem %s26_s25, 1024  ;;  %p463_p4 = scmp.lt.s32.totalorder %s26_s25, %s26_s25 }
   0x9   :  { %p459_p3 = scmp.ne.s32.totalorder %s26_s25, %s458_s10  ;;  %p464_p5 = scmp.lt.s32.totalorder %s458_s10, %s458_s10 }
   0xb   :  { %p465_p6 = por %p464_p5, %p463_p4 }
   0xd   :  { %p466_p7 = pnand %p465_p6, %p459_p3 }
   0xf   :  { %469 = shalt.err (!%p466_p7)
}
  0x10   :  { %s497_s11 = smov 64   ;;  %s498_s12 = smov 4  }
  0x11   :  { %31 = dma.hbm_to_vmem [thread:$0]  %s609_s3, 1024, %s26_s25, [#allocation3], %s497_s11, %s497_s11, %s498_s12  }
  0x12   :  { %s499_s15 = smov [#allocation4]   ;;  %s470_s19 = scalar_lea.hbm %s611_s5, 1024 }
  0x13   :  { %s39_s16 = sshll.u32 %s499_s15, 4  ;;  %p471_p8 = scmp.ne.s32.totalorder %s611_s5, %s470_s19  ;;  %s40_s16 = int_to_ptr.vmem [resolvable:$true] %s39_s16 }
  0x14   :  { %p474_p9 = scmp.lt.u32.totalorder %s470_s19, %s611_s5 }
  0x16   :  { %p476_p10 = pnand %p474_p9, %p471_p8 }
  0x18   :  { %479 = shalt.err (!%p476_p10)
}
  0x19   :  { %s480_s24 = scalar_lea.vmem %s40_s16, 1024  ;;  %p485_p12 = scmp.lt.s32.totalorder %s40_s16, %s40_s16 }
  0x1a   :  { %p481_p11 = scmp.ne.s32.totalorder %s40_s16, %s480_s24  ;;  %p486_p13 = scmp.lt.s32.totalorder %s480_s24, %s480_s24 }
  0x1c   :  { %p487_p0 = por %p486_p13, %p485_p12 }
  0x1e   :  { %p488_p1 = pnand %p487_p0, %p481_p11 }
  0x20   :  { %491 = shalt.err (!%p488_p1)
}
  0x21   :  { %45 = dma.hbm_to_vmem [thread:$0]  %s611_s5, 1024, %s40_s16, [#allocation5], %s497_s11, %s497_s11, %s498_s12  }
  0x22   :  { %492 = dma.done.wait [#allocation3], 1024  }
  0x23   :  { %493 = vsyncadd [#allocation3], 4294966272 }
  0x24   :  { %494 = dma.done.wait [#allocation5], 1024  }
  0x25   :  { %495 = vsyncadd [#allocation5], 4294966272  ;;  %v500_v0 = vmov 0   ;;  %v501_v1 = vmov 2   ;;  %v502_v2 = vmov 0.0   ;;  %v55_v3 = vld [vmem:[%s606_s0] sm:$0xff]  ;;  %v62_v20 = vlaneseq }
  0x26   :  { %427 = vset.pattern.permute.xlu0 %v500_v0  ;;  %429 = vset.pattern.permute.xlu1 %v501_v1  ;;  %v432_v4 = vld [vmem:[#allocation2] sm:$0xff]   ;;  %v433_v5 = vld [vmem:[#allocation2 + $0x8] sm:$0xff]   ;;  %v503_v6 = vmov 1   ;;  %v504_v7 = vmov 3   ;;  %v434_v8 = vld [vmem:[#allocation2 + $0x10] sm:$0xff]   ;;  %vm505_vm0 = vmmov 0  }
  0x27   :  { %377 = vmatprep.subr.bf16.mxu0 %v502_v2  ;;  %397 = vmatprep.subr.bf16.mxu1 %v502_v2  ;;  %v435_v9 = vld [vmem:[#allocation2 + $0x18] sm:$0xff]   ;;  %v436_v10 = vld [vmem:[#allocation2 + $0x20] sm:$0xff]   ;;  %v437_v11 = vld [vmem:[#allocation2 + $0x28] sm:$0xff]   ;;  %v63_v21 = vshrl.u32 %v62_v20, 7  ;;  %vm332_vm1 = vcmask 15360  }
  0x28   :  { %59 = vperm.xlu0 %427, %v55_v3   ;;  %78 = vperm.xlu1 %429, %v55_v3   ;;  %v440_v12 = vld [vmem:[#allocation4] sm:$0xff]   ;;  %v441_v13 = vld [vmem:[#allocation4 + $0x8] sm:$0xff]   ;;  %v438_v14 = vld [vmem:[#allocation2 + $0x30] sm:$0xff]  }
  0x29   :  { %378 = vmatpush3.bf16.msra.mxu0 %v432_v4  ;;  %393 = vmatprep.mubr.msk.bf16.mxu0 %vm505_vm0, %v502_v2  ;;  %v442_v15 = vld [vmem:[#allocation4 + $0x10] sm:$0xff]   ;;  %v439_v16 = vld [vmem:[#allocation2 + $0x38] sm:$0xff]   ;;  %v444_v18 = vld [vmem:[#allocation4 + $0x20] sm:$0xff]   ;;  %v64_v22 = vsub.s32 0, %v63_v21  ;;  %v73_v23 = vsub.s32 1, %v63_v21  ;;  %v83_v26 = vsub.s32 2, %v63_v21 }
  0x2a   :  { %379 = vmatprep.subr.bf16.mxu0 %v502_v2  ;;  %413 = vmatprep.mubr.msk.bf16.mxu1 %vm505_vm0, %v502_v2  ;;  %v443_v17 = vld [vmem:[#allocation4 + $0x18] sm:$0xff]   ;;  %v445_v19 = vld [vmem:[#allocation4 + $0x28] sm:$0xff]   ;;  %v56_v24 = vld [vmem:[%s607_s1] sm:$0xf]  ;;  %v93_v28 = vsub.s32 3, %v63_v21 }
  0x2b   :  { %398 = vmatpush3.bf16.msra.mxu1 %v440_v12  ;;  %v65_v29 = vrot.slane %v56_v24, %v64_v22  ;;  %v74_v30 = vrot.slane %v56_v24, %v73_v23  ;;  %v84_v31 = vrot.slane %v56_v24, %v83_v26  ;;  %v340_v41 = vld [vmem:[%s608_s2] ss:$0 sm:$0xff]  ;;  %v446_v46 = vld [vmem:[#allocation4 + $0x30] sm:$0xff]   ;;  %v447_v47 = vld [vmem:[#allocation4 + $0x38] sm:$0xff]  }
  0x2c   :  { %428 = vset.pattern.permute.xlu0 %v503_v6  ;;  %430 = vset.pattern.permute.xlu1 %v504_v7  ;;  %v94_v32 = vrot.slane %v56_v24, %v93_v28  ;;  %v341_v48 = vld [vmem:[%s610_s4] ss:$0 sm:$0xff] }
  0x2d   :  { %68 = vperm.xlu0 %428, %v55_v3   ;;  %88 = vperm.xlu1 %430, %v55_v3   ;;  %v358_v56 = vld [vmem:[%s612_s6] ss:$0 sm:$0xff] }
  0x2e   :  { %380 = vmatpush3.bf16.msra.mxu0 %v433_v5  ;;  %399 = vmatprep.subr.bf16.mxu1 %v502_v2 }
  0x2f   :  { %381 = vmatprep.subr.bf16.mxu0 %v502_v2  ;;  %400 = vmatpush3.bf16.msra.mxu1 %v441_v13 }
  0x30   :  { %401 = vmatprep.subr.bf16.mxu1 %v502_v2 }
  0x31   :  { %431 = vset.pattern.permute.xlu0 %v504_v7 }
  0x32   :  { %382 = vmatpush3.bf16.msra.mxu0 %v434_v8 }
  0x33   :  { %383 = vmatprep.subr.bf16.mxu0 %v502_v2  ;;  %402 = vmatpush3.bf16.msra.mxu1 %v442_v15 }
  0x34   :  { %403 = vmatprep.subr.bf16.mxu1 %v502_v2 }
  0x36   :  { %384 = vmatpush3.bf16.msra.mxu0 %v435_v9 }
  0x37   :  { %385 = vmatprep.subr.bf16.mxu0 %v502_v2  ;;  %404 = vmatpush3.bf16.msra.mxu1 %v443_v17 }
  0x38   :  { %405 = vmatprep.subr.bf16.mxu1 %v502_v2 }
  0x3a   :  { %386 = vmatpush3.bf16.msra.mxu0 %v436_v10 }
  0x3b   :  { %387 = vmatprep.subr.bf16.mxu0 %v502_v2  ;;  %406 = vmatpush3.bf16.msra.mxu1 %v444_v18 }
  0x3c   :  { %407 = vmatprep.subr.bf16.mxu1 %v502_v2 }
  0x3e   :  { %388 = vmatpush3.bf16.msra.mxu0 %v437_v11 }
  0x3f   :  { %389 = vmatprep.subr.bf16.mxu0 %v502_v2  ;;  %408 = vmatpush3.bf16.msra.mxu1 %v445_v19 }
  0x40   :  { %409 = vmatprep.subr.bf16.mxu1 %v502_v2 }
  0x42   :  { %390 = vmatpush3.bf16.msra.mxu0 %v438_v14 }
  0x43   :  { %391 = vmatprep.subr.bf16.mxu0 %v502_v2  ;;  %410 = vmatpush3.bf16.msra.mxu1 %v446_v46 }
  0x44   :  { %411 = vmatprep.subr.bf16.mxu1 %v502_v2 }
  0x46   :  { %392 = vmatpush3.bf16.msra.mxu0 %v439_v16 }
  0x47   :  { %412 = vmatpush3.bf16.msra.mxu1 %v447_v47 }
  0xa7   :  { %v60_v25 = vpop.permute.xlu0 %59  ;;  %v79_v27 = vpop.permute.xlu1 %78 }
  0xa8   :  { %v66_v35 = vmul.f32 %v65_v29, %v60_v25  ;;  %v85_v37 = vmul.f32 %v84_v31, %v79_v27 }
  0xac   :  { %v69_v33 = vpop.permute.xlu0 %68  ;;  %v89_v34 = vpop.permute.xlu1 %88 }
  0xad   :  { %v75_v36 = vmul.f32 %v74_v30, %v69_v33  ;;  %v95_v39 = vmul.f32 %v94_v32, %v89_v34 }
  0xaf   :  { %v76_v38 = vadd.f32 %v75_v36, %v66_v35 }
  0xb1   :  { %v86_v40 = vadd.f32 %v85_v37, %v76_v38 }
  0xb3   :  { %v96_v42 = vadd.f32 %v95_v39, %v86_v40 }
  0xb5   :  { %v104_v43 = vadd.f32 %v340_v41, %v96_v42 }
  0xb7   :  { %v105_v44 = vmax.f32 %v104_v43, 0.0 }
  0xb9   :  { %v106_v45 = vpack.c.bf16 %v105_v44, %v105_v44 }
  0xbb   :  { %394 = vmatmul.mubr.bf16.vlgmr.msra.gmra.mrb[0].mxu0 %v106_v45 }
 0x18e   :  { %v212_v49 = vpop.f32.mrb[0].mxu0 }
 0x18f   :  { %v213_v50 = vadd.f32 %v341_v48, %v212_v49  ;;  %v395_v51 = vpop.f32.mrb[1].mxu0 }
 0x190   :  { %v215_v52 = vpop.f32.mrb[2].mxu0 }
 0x191   :  { %v218_v53 = vmax.f32 %v213_v50, 0.0  ;;  %v396_v54 = vpop.f32.mrb[3].mxu0 }
 0x193   :  { %v219_v55 = vpack.c.bf16 %v218_v53, %v218_v53 }
 0x195   :  { %414 = vmatmul.mubr.bf16.vlgmr.msra.gmra.mrb[0].mxu1 %v219_v55 }
 0x268   :  { %v318_v57 = vpop.f32.mrb[0].mxu1 }
 0x269   :  { %v331_v58 = vadd.f32 %v358_v56, %v318_v57  ;;  %v415_v59 = vpop.f32.mrb[1].mxu1 }
 0x26a   :  { %v321_v60 = vpop.f32.mrb[2].mxu1 }
 0x26b   :  { %333 = vst.msk [vmem:[%s613_s7] sm:$0xff] %vm332_vm1, %v331_v58  ;;  %v416_v61 = vpop.f32.mrb[3].mxu1 }
 0x26c   :  { %338 = vsyncpa [#allocation3], 1 }
 0x26d   :  { %339 = vsyncpa [#allocation5], 1 }

</bundles_post_ra>
